<compile_context>
chip_gen: v6e
topology: v6e:2x2x1
jax: 0.10.0
libtpu: 0.0.40
codegen_flags: <defaults>
</compile_context>

<pallas_src>
import functools

import jax
import jax.numpy as jnp
from jax.experimental import pallas as pl
from jax.experimental.pallas import tpu as pltpu

H1_P = 128   # hidden 100 padded to 128 (lane-dense)
H2_P = 512   # hidden 500 padded to 512 (lane-dense)


def _round_up(n, m):
    return ((n + m - 1) // m) * m


def _actor_kernel(x_ref, w12_ref, w3_ref, b_ref, o_ref, *, din_p, act):
    """One batch tile: x @ W1 -> relu -> @ W2 -> relu -> @ W3 -> softmax."""
    x = x_ref[...]                                    # bf16 [TB, din_p]

    # Static, tile-aligned views into the packed weight / bias slabs.
    w1 = w12_ref[0:din_p, 0:H1_P]                     # bf16 [din_p, 128]
    w2 = w12_ref[din_p:din_p + H1_P, 0:H2_P]          # bf16 [128, 512]
    w3 = w3_ref[...]                                  # bf16 [512, act]
    b1 = b_ref[0:1, 0:H1_P]                           # f32  [1, 128]
    b2 = b_ref[0:1, H1_P:H1_P + H2_P]                 # f32  [1, 512]
    b3 = b_ref[0:1, H1_P + H2_P:H1_P + H2_P + act]    # f32  [1, act]

    # bf16 MXU matmuls with f32 accumulation; bias + ReLU in f32.
    h1 = jnp.dot(x, w1, preferred_element_type=jnp.float32) + b1
    h1 = jnp.maximum(h1, 0.0)
    h2 = jnp.dot(h1.astype(jnp.bfloat16), w2,
                 preferred_element_type=jnp.float32) + b2
    h2 = jnp.maximum(h2, 0.0)
    logits = jnp.dot(h2.astype(jnp.bfloat16), w3,
                     preferred_element_type=jnp.float32) + b3

    # Numerically stable softmax over the (unpadded) action dim, f32.
    m = jnp.max(logits, axis=-1, keepdims=True)
    e = jnp.exp(logits - m)
    denom = jnp.sum(e, axis=-1, keepdims=True)
    o_ref[...] = (e * pl.reciprocal(denom, approx=False)).astype(o_ref.dtype)


def pack_params(params, state_space, action_space):
    """Pad + pack the 6 parameter tensors into 3 slabs (2x bf16, 1x f32)."""
    w1, b1, w2, b2, w3, b3 = params     # w: [in, out] f32, b: [out] f32
    h1, h2 = w1.shape[1], w2.shape[1]
    assert h1 <= H1_P and h2 <= H2_P
    din_p = _round_up(max(state_space, 1), 128)

    # bf16 weight slab [din_p + 128, 512]:
    #   rows [0, din_p)        cols [0, 128)  -> W1 (zero-padded)
    #   rows [din_p, din_p+128) cols [0, 512) -> W2 (zero-padded)
    w12 = jnp.zeros((din_p + H1_P, H2_P), jnp.bfloat16)
    w12 = w12.at[:state_space, :h1].set(w1.astype(jnp.bfloat16))
    w12 = w12.at[din_p:din_p + h1, :h2].set(w2.astype(jnp.bfloat16))

    # W3 zero-padded on rows only; action dim stays UNPADDED (softmax safety).
    w3p = jnp.zeros((H2_P, action_space), jnp.bfloat16)
    w3p = w3p.at[:h2, :].set(w3.astype(jnp.bfloat16))

    # f32 bias slab [1, 128 + 512 + action_space].
    biases = jnp.zeros((1, H1_P + H2_P + action_space), jnp.float32)
    biases = biases.at[0, :h1].set(b1)
    biases = biases.at[0, H1_P:H1_P + h2].set(b2)
    biases = biases.at[0, H1_P + H2_P:].set(b3)
    return w12, w3p, biases


@functools.partial(jax.jit,
                   static_argnames=("state_space", "action_space", "tile_b"))
def actor_forward(x, w12, w3p, biases, *, state_space, action_space,
                  tile_b=256):
    batch = x.shape[0]
    din_p = w12.shape[0] - H1_P

    # Pad batch to a tile multiple (>=16 so bf16 activation tiles are native)
    # and the state dim to din_p; padded rows/cols are zero and sliced off.
    tb = tile_b if batch >= tile_b else _round_up(max(batch, 1), 16)
    bp = _round_up(batch, tb)
    xp = jnp.zeros((bp, din_p), jnp.bfloat16)
    xp = xp.at[:batch, :state_space].set(x.astype(jnp.bfloat16))

    kernel = functools.partial(_actor_kernel, din_p=din_p, act=action_space)
    out = pl.pallas_call(
        kernel,
        out_shape=jax.ShapeDtypeStruct((bp, action_space), jnp.float32),
        grid=(bp // tb,),
        in_specs=[
            pl.BlockSpec((tb, din_p), lambda i: (i, 0)),               # x tile
            pl.BlockSpec((din_p + H1_P, H2_P), lambda i: (0, 0)),      # W1+W2 (VMEM-resident)
            pl.BlockSpec((H2_P, action_space), lambda i: (0, 0)),      # W3    (VMEM-resident)
            pl.BlockSpec((1, H1_P + H2_P + action_space),
                         lambda i: (0, 0)),                            # biases
        ],
        out_specs=pl.BlockSpec((tb, action_space), lambda i: (i, 0)),
        compiler_params=pltpu.CompilerParams(
            dimension_semantics=("parallel",),          # split batch tiles across TCs
            vmem_limit_bytes=32 * 1024 * 1024,
        ),
    )(xp, w12, w3p, biases)
    return out[:batch]


def init_params(key, state_space, action_space):
    """Deterministic init mimicking nn.Linear default (uniform +-1/sqrt(fan_in))."""
    dims = [(state_space, 100), (100, 500), (500, action_space)]
    params = []
    for i, (fan_in, fan_out) in enumerate(dims):
        kw, kb = jax.random.split(jax.random.fold_in(key, i))
        bound = 1.0 / (fan_in ** 0.5)
        w = jax.random.uniform(kw, (fan_in, fan_out), jnp.float32, -bound, bound)
        b = jax.random.uniform(kb, (fan_out,), jnp.float32, -bound, bound)
        params += [w, b]
    return tuple(params)


def actor_reference(x, params):
    w1, b1, w2, b2, w3, b3 = params
    h1 = jnp.maximum(x @ w1 + b1, 0.0)
    h2 = jnp.maximum(h1 @ w2 + b2, 0.0)
    return jax.nn.softmax(h2 @ w3 + b3, axis=-1)


if __name__ == "__main__":
    key = jax.random.PRNGKey(0)
    state_space, action_space = 32, 8

    k_x, k_p, k_x2 = jax.random.split(key, 3)
    params = init_params(k_p, state_space, action_space)
    w12, w3p, biases = pack_params(params, state_space, action_space)

    # Small single-tile case (batch 4, padded to 16 internally).
    x = jax.random.normal(k_x, (4, state_space), jnp.float32)
    out = jax.block_until_ready(
        actor_forward(x, w12, w3p, biases,
                      state_space=state_space, action_space=action_space))
    ref = actor_reference(x, params)
    assert out.shape == (4, action_space)
    assert jnp.allclose(jnp.sum(out, axis=-1), 1.0, atol=1e-5)
    # bf16 matmuls -> tolerance relaxed vs the f32 reference.
    assert jnp.allclose(out, ref, atol=2e-2, rtol=2e-2), \
        float(jnp.max(jnp.abs(out - ref)))

    # Multi-tile grid case (batch 48, tile_b=16 -> 3 parallel batch tiles).
    x2 = jax.random.normal(k_x2, (48, state_space), jnp.float32)
    out2 = jax.block_until_ready(
        actor_forward(x2, w12, w3p, biases, state_space=state_space,
                      action_space=action_space, tile_b=16))
    ref2 = actor_reference(x2, params)
    assert out2.shape == (48, action_space)
    assert jnp.allclose(jnp.sum(out2, axis=-1), 1.0, atol=1e-5)
    assert jnp.allclose(out2, ref2, atol=2e-2, rtol=2e-2)

    print("KERNEL_OK")
</pallas_src>

<mosaic_0001>
module attributes {stable_mosaic.version = 11 : i64} {
  func.func @_actor_kernel(%arg0: i32, %arg1: memref<16x128xbf16, #tpu.memory_space<vmem>>, %arg2: memref<256x512xbf16, #tpu.memory_space<vmem>>, %arg3: memref<512x8xbf16, #tpu.memory_space<vmem>>, %arg4: memref<1x648xf32, #tpu.memory_space<vmem>>, %arg5: memref<16x8xf32, #tpu.memory_space<vmem>>) attributes {dimension_semantics = [#tpu.dimension_semantics<parallel>], iteration_bounds = array<i64: 1>, scalar_prefetch = 0 : i64, scratch_operands = 0 : i64, tpu.core_type = #tpu.core_type<tc>, window_params = [{transform_indices = @transform_0, window_bounds = array<i64: 16, 128>}, {pipeline_mode = #tpu.pipeline_mode<synchronous>, transform_indices = @transform_1, window_bounds = array<i64: 256, 512>}, {pipeline_mode = #tpu.pipeline_mode<synchronous>, transform_indices = @transform_2, window_bounds = array<i64: 512, 8>}, {pipeline_mode = #tpu.pipeline_mode<synchronous>, transform_indices = @transform_3, window_bounds = array<i64: 1, 648>}, {transform_indices = @transform_4, window_bounds = array<i64: 16, 8>}]} {
    %c0 = arith.constant 0 : index
    %c0_0 = arith.constant 0 : index
    %0 = vector.load %arg1[%c0, %c0_0] : memref<16x128xbf16, #tpu.memory_space<vmem>>, vector<16x128xbf16>
    %c0_1 = arith.constant 0 : index
    %c0_2 = arith.constant 0 : index
    %1 = vector.load %arg2[%c0_1, %c0_2] : memref<256x512xbf16, #tpu.memory_space<vmem>>, vector<128x128xbf16>
    %c128 = arith.constant 128 : index
    %c0_3 = arith.constant 0 : index
    %2 = vector.load %arg2[%c128, %c0_3] : memref<256x512xbf16, #tpu.memory_space<vmem>>, vector<128x512xbf16>
    %c0_4 = arith.constant 0 : index
    %c0_5 = arith.constant 0 : index
    %3 = vector.load %arg3[%c0_4, %c0_5] : memref<512x8xbf16, #tpu.memory_space<vmem>>, vector<512x8xbf16>
    %c0_6 = arith.constant 0 : index
    %c0_7 = arith.constant 0 : index
    %4 = vector.load %arg4[%c0_6, %c0_7] : memref<1x648xf32, #tpu.memory_space<vmem>>, vector<1x128xf32>
    %c0_8 = arith.constant 0 : index
    %c128_9 = arith.constant 128 : index
    %5 = vector.load %arg4[%c0_8, %c128_9] : memref<1x648xf32, #tpu.memory_space<vmem>>, vector<1x512xf32>
    %c0_10 = arith.constant 0 : index
    %c640 = arith.constant 640 : index
    %6 = vector.load %arg4[%c0_10, %c640] : memref<1x648xf32, #tpu.memory_space<vmem>>, vector<1x8xf32>
    %cst = arith.constant dense<0.000000e+00> : vector<16x128xf32>
    %7 = tpu.matmul %0, %1, %cst {dimension_numbers = #tpu.dot_dimension_numbers<[1], [0], [0], [1], [0, 0, 1, 1], [], []>} : vector<16x128xbf16>, vector<128x128xbf16>, vector<16x128xf32> -> vector<16x128xf32>
    %8 = vector.broadcast %4 : vector<1x128xf32> to vector<16x128xf32>
    %9 = arith.addf %7, %8 : vector<16x128xf32>
    %cst_11 = arith.constant 0.000000e+00 : f32
    %10 = vector.broadcast %cst_11 : f32 to vector<16x128xf32>
    %11 = arith.maximumf %9, %10 : vector<16x128xf32>
    %12 = arith.truncf %11 : vector<16x128xf32> to vector<16x128xbf16>
    %cst_12 = arith.constant dense<0.000000e+00> : vector<16x512xf32>
    %13 = tpu.matmul %12, %2, %cst_12 {dimension_numbers = #tpu.dot_dimension_numbers<[1], [0], [0], [1], [0, 0, 1, 1], [], []>} : vector<16x128xbf16>, vector<128x512xbf16>, vector<16x512xf32> -> vector<16x512xf32>
    %14 = vector.broadcast %5 : vector<1x512xf32> to vector<16x512xf32>
    %15 = arith.addf %13, %14 : vector<16x512xf32>
    %cst_13 = arith.constant 0.000000e+00 : f32
    %16 = vector.broadcast %cst_13 : f32 to vector<16x512xf32>
    %17 = arith.maximumf %15, %16 : vector<16x512xf32>
    %18 = arith.truncf %17 : vector<16x512xf32> to vector<16x512xbf16>
    %cst_14 = arith.constant dense<0.000000e+00> : vector<16x8xf32>
    %19 = tpu.matmul %18, %3, %cst_14 {dimension_numbers = #tpu.dot_dimension_numbers<[1], [0], [0], [1], [0, 0, 1, 1], [], []>} : vector<16x512xbf16>, vector<512x8xbf16>, vector<16x8xf32> -> vector<16x8xf32>
    %20 = vector.broadcast %6 : vector<1x8xf32> to vector<16x8xf32>
    %21 = arith.addf %19, %20 : vector<16x8xf32>
    %cst_15 = arith.constant dense<0xFF800000> : vector<16xf32>
    %22 = vector.multi_reduction <maximumf>, %21, %cst_15 [1] : vector<16x8xf32> to vector<16xf32>
    %23 = vector.shape_cast %22 : vector<16xf32> to vector<16x1xf32>
    %24 = vector.broadcast %23 : vector<16x1xf32> to vector<16x8xf32>
    %25 = arith.subf %21, %24 : vector<16x8xf32>
    %26 = math.exp %25 : vector<16x8xf32>
    %cst_16 = arith.constant dense<0.000000e+00> : vector<16xf32>
    %27 = vector.multi_reduction <add>, %26, %cst_16 [1] : vector<16x8xf32> to vector<16xf32>
    %28 = vector.shape_cast %27 : vector<16xf32> to vector<16x1xf32>
    %29 = tpu.reciprocal %28 : vector<16x1xf32> -> vector<16x1xf32>
    %30 = vector.broadcast %29 : vector<16x1xf32> to vector<16x8xf32>
    %31 = arith.mulf %26, %30 : vector<16x8xf32>
    %c0_17 = arith.constant 0 : index
    %c0_18 = arith.constant 0 : index
    %32 = vector.load %arg5[%c0_17, %c0_18] : memref<16x8xf32, #tpu.memory_space<vmem>>, vector<16x8xf32>
    tpu.vector_store %arg5[%c0_17, %c0_18], %31 {strides = array<i32>} : memref<16x8xf32, #tpu.memory_space<vmem>>, vector<16x8xf32>,
    return
  }
  func.func @transform_0(%arg0: i32) -> (i32, i32) {
    %c0_i32 = arith.constant 0 : i32
    %c0_i32_0 = arith.constant 0 : i32
    return %arg0, %c0_i32 : i32, i32
  }
  func.func @transform_1(%arg0: i32) -> (i32, i32) {
    %c0_i32 = arith.constant 0 : i32
    %c0_i32_0 = arith.constant 0 : i32
    %c0_i32_1 = arith.constant 0 : i32
    return %c0_i32, %c0_i32_0 : i32, i32
  }
  func.func @transform_2(%arg0: i32) -> (i32, i32) {
    %c0_i32 = arith.constant 0 : i32
    %c0_i32_0 = arith.constant 0 : i32
    %c0_i32_1 = arith.constant 0 : i32
    return %c0_i32, %c0_i32_0 : i32, i32
  }
  func.func @transform_3(%arg0: i32) -> (i32, i32) {
    %c0_i32 = arith.constant 0 : i32
    %c0_i32_0 = arith.constant 0 : i32
    %c0_i32_1 = arith.constant 0 : i32
    return %c0_i32, %c0_i32_0 : i32, i32
  }
  func.func @transform_4(%arg0: i32) -> (i32, i32) {
    %c0_i32 = arith.constant 0 : i32
    %c0_i32_0 = arith.constant 0 : i32
    return %arg0, %c0_i32 : i32, i32
  }
}

</mosaic_0001>

<bundles_post_ra>
// kernel: actor_forward.1
= control target key start
LH: loop header
LB: loop body
LE: loop exit
PB: predicated region body
PF: predicated region fallthrough
CT: control target
= control target key end

     0   :  { %9 = vsyncpa [#allocation3], 0  ;;  %s1115_s15 = smov [#allocation2]   ;;  %s1269_s0 = inlined_call_operand.vmem [shape: bf16[16,128], index: 0, kind: input, shape index: {}]   ;;  %s1270_s1 = inlined_call_operand.hbm [shape: bf16[256,512], index: 1, kind: input, shape index: {}]   ;;  %s1271_s2 = inlined_call_operand.vmem [shape: bf16[512,8], index: 2, kind: input, shape index: {}]   ;;  %s1272_s3 = inlined_call_operand.vmem [shape: f32[1,648], index: 3, kind: input, shape index: {}]   ;;  %s1273_s4 = inlined_call_operand.vmem [shape: f32[16,8], index: 4, kind: output, shape index: {}]  }
   0x1   :  { %s17_s16 = sshll.u32 %s1115_s15, 4  ;;  %s18_s16 = int_to_ptr.vmem [resolvable:$true] %s17_s16 }
   0x2   :  { %s1101_s17 = scalar_lea.vmem %s18_s16, 8192  ;;  %p1106_p1 = scmp.lt.s32.totalorder %s18_s16, %s18_s16 }
   0x3   :  { %p1102_p0 = scmp.ne.s32.totalorder %s18_s16, %s1101_s17  ;;  %p1107_p2 = scmp.lt.s32.totalorder %s1101_s17, %s1101_s17 }
   0x5   :  { %p1108_p3 = por %p1107_p2, %p1106_p1 }
   0x7   :  { %p1109_p4 = pnand %p1108_p3, %p1102_p0 }
   0x9   :  { %1112 = shalt.err (!%p1109_p4)
}
   0xa   :  { %s1116_s18 = smov 256   ;;  %s1117_s19 = smov 16  }
   0xb   :  { %23 = dma.hbm_to_vmem [thread:$0]  %s1270_s1, 8192, %s18_s16, [#allocation3], %s1116_s18, %s1116_s18, %s1117_s19  }
   0xc   :  { %1113 = dma.done.wait [#allocation3], 8192  }
   0xd   :  { %1114 = vsyncadd [#allocation3], 4294959104  ;;  %v1118_v0 = vmov 0.0   ;;  %vm1119_vm0 = vmmov 0   ;;  %v996_v1 = vld [vmem:[#allocation2 + $0xe0] ss:$16 sps:$4 sm:$0xff]  }
   0xe   :  { %970 = vmatprep.subr.bf16.mxu0 %v1118_v0  ;;  %986 = vmatprep.mubr.msk.bf16.mxu0 %vm1119_vm0, %v1118_v0  ;;  %v997_v2 = vld [vmem:[#allocation2 + $0xc0] ss:$16 sps:$4 sm:$0xff]   ;;  %v1005_v4 = vld [vmem:[#allocation2 + $0x1e4] ss:$16 sps:$4 sm:$0xff]   ;;  %v1009_v20 = vld [vmem:[#allocation2 + $0x1ec] ss:$16 sps:$4 sm:$0xff]  }
   0xf   :  { %971 = vmatpush3.bf16.msra.mxu0 %v996_v1  ;;  %v998_v3 = vld [vmem:[#allocation2 + $0xa0] ss:$16 sps:$4 sm:$0xff]   ;;  %434 = vmatprep.subr.bf16.mxu1 %v1005_v4  ;;  %v1011_v7 = vld [vmem:[#allocation2 + $0x1c4] ss:$16 sps:$4 sm:$0xff]   ;;  %v1007_v22 = vld [vmem:[#allocation2 + $0x1e8] ss:$16 sps:$4 sm:$0xff]  }
  0x10   :  { %972 = vmatprep.subr.bf16.mxu0 %v1118_v0  ;;  %v999_v5 = vld [vmem:[#allocation2 + $0x80] ss:$16 sps:$4 sm:$0xff]   ;;  %v1017_v10 = vld [vmem:[#allocation2 + $0x1a4] ss:$16 sps:$4 sm:$0xff]   ;;  %v1015_v23 = vld [vmem:[#allocation2 + $0x1cc] ss:$16 sps:$4 sm:$0xff]  }
  0x11   :  { %v1010_v6 = vld [vmem:[#allocation2 + $0x1e0] ss:$16 sps:$4 sm:$0xff]   ;;  %v1023_v13 = vld [vmem:[#allocation2 + $0x184] ss:$16 sps:$4 sm:$0xff]   ;;  %v1013_v24 = vld [vmem:[#allocation2 + $0x1c8] ss:$16 sps:$4 sm:$0xff]  }
  0x12   :  { %v1000_v8 = vld [vmem:[#allocation2 + $0x60] ss:$16 sps:$4 sm:$0xff]   ;;  %435 = vmatpush1.bf16.msra.mxu1 %v1010_v6  ;;  %v1029_v16 = vld [vmem:[#allocation2 + $0x164] ss:$16 sps:$4 sm:$0xff]   ;;  %v1021_v25 = vld [vmem:[#allocation2 + $0x1ac] ss:$16 sps:$4 sm:$0xff]  }
  0x13   :  { %973 = vmatpush3.bf16.msra.mxu0 %v997_v2  ;;  %436 = vmatprep.subr.bf16.mxu1 %v1011_v7  ;;  %v1016_v9 = vld [vmem:[#allocation2 + $0x1c0] ss:$16 sps:$4 sm:$0xff]   ;;  %v1035_v19 = vld [vmem:[#allocation2 + $0x144] ss:$16 sps:$4 sm:$0xff]   ;;  %v1019_v26 = vld [vmem:[#allocation2 + $0x1a8] ss:$16 sps:$4 sm:$0xff]  }
  0x14   :  { %974 = vmatprep.subr.bf16.mxu0 %v1118_v0  ;;  %v1001_v11 = vld [vmem:[#allocation2 + $0x40] ss:$16 sps:$4 sm:$0xff]   ;;  %v1027_v27 = vld [vmem:[#allocation2 + $0x18c] ss:$16 sps:$4 sm:$0xff]   ;;  %v1025_v28 = vld [vmem:[#allocation2 + $0x188] ss:$16 sps:$4 sm:$0xff]  }
  0x15   :  { %v1022_v12 = vld [vmem:[#allocation2 + $0x1a0] ss:$16 sps:$4 sm:$0xff]   ;;  %v1033_v29 = vld [vmem:[#allocation2 + $0x16c] ss:$16 sps:$4 sm:$0xff]   ;;  %v1031_v30 = vld [vmem:[#allocation2 + $0x168] ss:$16 sps:$4 sm:$0xff]  }
  0x16   :  { %437 = vmatpush1.bf16.msra.mxu1 %v1016_v9  ;;  %v1002_v14 = vld [vmem:[#allocation2 + $0x20] ss:$16 sps:$4 sm:$0xff]   ;;  %v1039_v31 = vld [vmem:[#allocation2 + $0x14c] ss:$16 sps:$4 sm:$0xff]   ;;  %v1037_v32 = vld [vmem:[#allocation2 + $0x148] ss:$16 sps:$4 sm:$0xff]  }
  0x17   :  { %975 = vmatpush3.bf16.msra.mxu0 %v998_v3  ;;  %438 = vmatprep.subr.bf16.mxu1 %v1017_v10  ;;  %v1028_v15 = vld [vmem:[#allocation2 + $0x180] ss:$16 sps:$4 sm:$0xff]   ;;  %v1041_v34 = vld [vmem:[#allocation2 + $0x124] ss:$16 sps:$4 sm:$0xff]   ;;  %v1045_v35 = vld [vmem:[#allocation2 + $0x12c] ss:$16 sps:$4 sm:$0xff]  }
  0x18   :  { %976 = vmatprep.subr.bf16.mxu0 %v1118_v0  ;;  %v1003_v17 = vld [vmem:[#allocation2] ss:$16 sps:$4 sm:$0xff]   ;;  %v1043_v36 = vld [vmem:[#allocation2 + $0x128] ss:$16 sps:$4 sm:$0xff]   ;;  %v1047_v38 = vld [vmem:[#allocation2 + $0x104] ss:$16 sps:$4 sm:$0xff]  }
  0x19   :  { %v1034_v18 = vld [vmem:[#allocation2 + $0x160] ss:$16 sps:$4 sm:$0xff]   ;;  %v1051_v39 = vld [vmem:[#allocation2 + $0x10c] ss:$16 sps:$4 sm:$0xff]   ;;  %v1049_v40 = vld [vmem:[#allocation2 + $0x108] ss:$16 sps:$4 sm:$0xff]  }
  0x1a   :  { %439 = vmatpush1.bf16.msra.mxu1 %v1022_v12  ;;  %v1004_v21 = vld [vmem:[%s1269_s0] sm:$0xff]   ;;  %v1120_v42 = vmov 0   ;;  %v1053_v43 = vld [vmem:[%s1271_s2 + $0x78] sm:$0xff]   ;;  %v1057_v57 = vld [vmem:[%s1271_s2 + $0x70] sm:$0xff]   ;;  %vm812_vm1 = vcmask 64512  }
  0x1b   :  { %977 = vmatpush3.bf16.msra.mxu0 %v999_v5  ;;  %440 = vmatprep.subr.bf16.mxu1 %v1023_v13  ;;  %v1040_v33 = vld [vmem:[#allocation2 + $0x140] ss:$16 sps:$4 sm:$0xff]   ;;  %v1054_v44 = vld [vmem:[%s1271_s2 + $0xf8] sm:$0xff]   ;;  %v1061_v61 = vld [vmem:[%s1271_s2 + $0x68] sm:$0xff]  }
  0x1c   :  { %978 = vmatprep.subr.bf16.mxu0 %v1118_v0  ;;  %v1046_v37 = vld [vmem:[#allocation2 + $0x120] ss:$16 sps:$4 sm:$0xff]   ;;  %466 = vmatprep.mubr.bf16.mxu1 %v1120_v42  ;;  %v1055_v54 = vld [vmem:[%s1271_s2 + $0x38] sm:$0xff]   ;;  %v1062_v62 = vld [vmem:[%s1271_s2 + $0xe8] sm:$0xff]  }
  0x1d   :  { %v1052_v41 = vld [vmem:[#allocation2 + $0x100] ss:$16 sps:$4 sm:$0xff]   ;;  %v1056_v55 = vld [vmem:[%s1271_s2 + $0xb8] sm:$0xff]   ;;  %v1063_v63 = vld [vmem:[%s1271_s2 + $0x28] sm:$0xff]  }
  0x1e   :  { %441 = vmatpush1.bf16.msra.mxu1 %v1028_v15  ;;  %v842_v45 = vld [vmem:[%s1272_s3] ss:$0 sm:$0xff]  ;;  %v1058_v58 = vld [vmem:[%s1271_s2 + $0xf0] sm:$0xff]   ;;  %v1069_v5 = vld [vmem:[%s1271_s2 + $0x58] sm:$0xff]  }
  0x1f   :  { %979 = vmatpush3.bf16.msra.mxu0 %v1000_v8  ;;  %442 = vmatprep.subr.bf16.mxu1 %v1029_v16  ;;  %v1059_v59 = vld [vmem:[%s1271_s2 + $0x30] sm:$0xff]   ;;  %v1065_v1 = vld [vmem:[%s1271_s2 + $0x60] sm:$0xff]   ;;  %v1070_v6 = vld [vmem:[%s1271_s2 + $0xd8] sm:$0xff]  }
  0x20   :  { %980 = vmatprep.subr.bf16.mxu0 %v1118_v0  ;;  %v1060_v60 = vld [vmem:[%s1271_s2 + $0xb0] sm:$0xff]   ;;  %v1066_v2 = vld [vmem:[%s1271_s2 + $0xe0] sm:$0xff]   ;;  %v1071_v7 = vld [vmem:[%s1271_s2 + $0x18] sm:$0xff]  }
  0x21   :  { %v1067_v3 = vld [vmem:[%s1271_s2 + $0x20] sm:$0xff]   ;;  %v1072_v8 = vld [vmem:[%s1271_s2 + $0x98] sm:$0xff]   ;;  %v1073_v9 = vld [vmem:[%s1271_s2 + $0x50] sm:$0xff]  }
  0x22   :  { %443 = vmatpush1.bf16.msra.mxu1 %v1034_v18  ;;  %v1068_v4 = vld [vmem:[%s1271_s2 + $0xa0] sm:$0xff]   ;;  %v1074_v10 = vld [vmem:[%s1271_s2 + $0xd0] sm:$0xff]   ;;  %v1077_v13 = vld [vmem:[%s1271_s2 + $0x48] sm:$0xff]  }
  0x23   :  { %981 = vmatpush3.bf16.msra.mxu0 %v1001_v11  ;;  %444 = vmatprep.subr.bf16.mxu1 %v1035_v19  ;;  %v1075_v11 = vld [vmem:[%s1271_s2 + $0x10] sm:$0xff]   ;;  %v1079_v15 = vld [vmem:[%s1271_s2 + $0x8] sm:$0xff]   ;;  %v1082_v18 = vld [vmem:[%s1271_s2 + $0xc0] sm:$0xff]  }
  0x24   :  { %982 = vmatprep.subr.bf16.mxu0 %v1118_v0  ;;  %v1076_v12 = vld [vmem:[%s1271_s2 + $0x90] sm:$0xff]   ;;  %v1080_v16 = vld [vmem:[%s1271_s2 + $0x88] sm:$0xff]   ;;  %v1083_v19 = vld [vmem:[%s1271_s2] sm:$0xff]  }
  0x26   :  { %445 = vmatpush1.bf16.msra.mxu1 %v1040_v33 }
  0x27   :  { %983 = vmatpush3.bf16.msra.mxu0 %v1002_v14  ;;  %446 = vmatprep.subr.bf16.mxu1 %v1041_v34  ;;  %v1078_v14 = vld [vmem:[%s1271_s2 + $0xc8] sm:$0xff]  }
  0x28   :  { %984 = vmatprep.subr.bf16.mxu0 %v1118_v0  ;;  %v1064_v0 = vld [vmem:[%s1271_s2 + $0xa8] sm:$0xff]  }
  0x2a   :  { %447 = vmatpush1.bf16.msra.mxu1 %v1046_v37 }
  0x2b   :  { %985 = vmatpush3.bf16.msra.mxu0 %v1003_v17  ;;  %448 = vmatprep.subr.bf16.mxu1 %v1047_v38  ;;  %v1081_v17 = vld [vmem:[%s1271_s2 + $0x40] sm:$0xff]  }
  0x2c   :  { %477 = vmatprep.subr.bf16.mxu0 %v1009_v20  ;;  %v1084_v20 = vld [vmem:[%s1271_s2 + $0x80] sm:$0xff]  }
  0x2e   :  { %987 = vmatmul.mubr.bf16.vlgmr.msra.gmra.mxu0 %v1004_v21  ;;  %449 = vmatpush1.bf16.msra.mxu1 %v1052_v41  ;;  %v254_v21 = vlaneseq }
  0x2f   :  { %478 = vmatpush1.bf16.msra.mxu0 %v1007_v22  ;;  %509 = vmatprep.mubr.bf16.mxu0 %v1120_v42 }
  0x30   :  { %479 = vmatprep.subr.bf16.mxu0 %v1015_v23  ;;  %926 = vmatprep.subr.bf16.mxu1 %v1053_v43  ;;  %v255_v22 = vshrl.u32 %v254_v21, 7 }
  0x32   :  { %v260_v23 = vsub.s32 1, %v255_v22 }
  0x33   :  { %480 = vmatpush1.bf16.msra.mxu0 %v1013_v24  ;;  %v268_v24 = vsub.s32 3, %v255_v22 }
  0x34   :  { %481 = vmatprep.subr.bf16.mxu0 %v1021_v25  ;;  %v256_v25 = vsub.s32 0, %v255_v22 }
  0x37   :  { %482 = vmatpush1.bf16.msra.mxu0 %v1019_v26  ;;  %v264_v26 = vsub.s32 2, %v255_v22 }
  0x38   :  { %483 = vmatprep.subr.bf16.mxu0 %v1027_v27  ;;  %v147_v27 = vld [vmem:[%s1272_s3 + $0x1] sm:$0xf] }
  0x39   :  { %v265_v33 = vrot.slane %v147_v27, %v264_v26 }
  0x3b   :  { %484 = vmatpush1.bf16.msra.mxu0 %v1025_v28 }
  0x3c   :  { %485 = vmatprep.subr.bf16.mxu0 %v1033_v29 }
  0x3f   :  { %486 = vmatpush1.bf16.msra.mxu0 %v1031_v30  ;;  %v261_v30 = vrot.slane %v147_v27, %v260_v23 }
  0x40   :  { %487 = vmatprep.subr.bf16.mxu0 %v1039_v31  ;;  %v269_v31 = vrot.slane %v147_v27, %v268_v24 }
  0x43   :  { %488 = vmatpush1.bf16.msra.mxu0 %v1037_v32  ;;  %v257_v32 = vrot.slane %v147_v27, %v256_v25 }
  0x44   :  { %489 = vmatprep.subr.bf16.mxu0 %v1045_v35 }
  0x47   :  { %490 = vmatpush1.bf16.msra.mxu0 %v1043_v36 }
  0x48   :  { %491 = vmatprep.subr.bf16.mxu0 %v1051_v39 }
  0x4b   :  { %492 = vmatpush1.bf16.msra.mxu0 %v1049_v40 }
  0x4c   :  { %948 = vmatprep.subr.bf16.mxu0 %v1054_v44 }
  0xee   :  { %v243_v46 = vpop.f32.mrf.mxu0 }
  0xef   :  { %v244_v48 = vadd.f32 %v842_v45, %v243_v46 }
  0xf0   :  { %v988_v47 = vpop.f32.mrf.mxu0 }
  0xf1   :  { %v250_v52 = vmax.f32 %v244_v48, 0.0 }
  0xf2   :  { %v246_v49 = vpop.f32.mrf.mxu0 }
  0xf3   :  { %v247_v50 = vadd.f32 %v842_v45, %v246_v49 }
  0xf4   :  { %v989_v51 = vpop.f32.mrf.mxu0 }
  0xf5   :  { %v251_v53 = vmax.f32 %v247_v50, 0.0 }
  0xf7   :  { %v252_v56 = vpack.c.bf16 %v251_v53, %v250_v52 }
  0xf9   :  { %467 = vmatmul.mubr.bf16.vlgmr.msra.gmra.mxu1 %v252_v56  ;;  %510 = vmatmul.mubr.bf16.vlgmr.msra.gmra.mxu0 %v252_v56 }
  0xfa   :  { %927 = vmatpush3.bf16.msra.mxu1 %v1055_v54  ;;  %949 = vmatpush3.bf16.msra.mxu0 %v1056_v55 }
  0xfb   :  { %928 = vmatprep.subr.bf16.mxu1 %v1057_v57  ;;  %950 = vmatprep.subr.bf16.mxu0 %v1058_v58 }
  0xfe   :  { %929 = vmatpush3.bf16.msra.mxu1 %v1059_v59  ;;  %951 = vmatpush3.bf16.msra.mxu0 %v1060_v60 }
  0xff   :  { %930 = vmatprep.subr.bf16.mxu1 %v1061_v61  ;;  %952 = vmatprep.subr.bf16.mxu0 %v1062_v62  ;;  %v884_v62 = vld [vmem:[%s1272_s3 + $0x5] ss:$0 sm:$0xff] }
 0x102   :  { %931 = vmatpush3.bf16.msra.mxu1 %v1063_v63  ;;  %953 = vmatpush3.bf16.msra.mxu0 %v1064_v0 }
 0x103   :  { %932 = vmatprep.subr.bf16.mxu1 %v1065_v1  ;;  %954 = vmatprep.subr.bf16.mxu0 %v1066_v2 }
 0x106   :  { %933 = vmatpush3.bf16.msra.mxu1 %v1067_v3  ;;  %955 = vmatpush3.bf16.msra.mxu0 %v1068_v4 }
 0x107   :  { %934 = vmatprep.subr.bf16.mxu1 %v1069_v5  ;;  %956 = vmatprep.subr.bf16.mxu0 %v1070_v6 }
 0x10a   :  { %935 = vmatpush3.bf16.msra.mxu1 %v1071_v7  ;;  %957 = vmatpush3.bf16.msra.mxu0 %v1072_v8 }
 0x10b   :  { %936 = vmatprep.subr.bf16.mxu1 %v1073_v9  ;;  %958 = vmatprep.subr.bf16.mxu0 %v1074_v10 }
 0x10e   :  { %937 = vmatpush3.bf16.msra.mxu1 %v1075_v11  ;;  %959 = vmatpush3.bf16.msra.mxu0 %v1076_v12 }
 0x10f   :  { %938 = vmatprep.subr.bf16.mxu1 %v1077_v13  ;;  %960 = vmatprep.subr.bf16.mxu0 %v1078_v14 }
 0x112   :  { %939 = vmatpush3.bf16.msra.mxu1 %v1079_v15  ;;  %961 = vmatpush3.bf16.msra.mxu0 %v1080_v16 }
 0x113   :  { %940 = vmatprep.subr.bf16.mxu1 %v1081_v17  ;;  %962 = vmatprep.subr.bf16.mxu0 %v1082_v18 }
 0x116   :  { %941 = vmatpush3.bf16.msra.mxu1 %v1083_v19  ;;  %963 = vmatpush3.bf16.msra.mxu0 %v1084_v20 }
 0x1b9   :  { %v468_v28 = vpop.f32.mrf.mxu1  ;;  %v511_v29 = vpop.f32.mrf.mxu0 }
 0x1ba   :  { %v469_v42 = vadd.f32 %v468_v28, %v257_v32  ;;  %v512_v43 = vadd.f32 %v511_v29, %v265_v33 }
 0x1bb   :  { %v470_v34 = vpop.f32.mrf.mxu1  ;;  %v513_v35 = vpop.f32.mrf.mxu0 }
 0x1bc   :  { %v471_v38 = vadd.f32 %v470_v34, %v261_v30  ;;  %v514_v39 = vadd.f32 %v513_v35, %v269_v31  ;;  %v520_v54 = vmax.f32 %v469_v42, 0.0  ;;  %v522_v55 = vmax.f32 %v512_v43, 0.0 }
 0x1bd   :  { %v472_v36 = vpop.f32.mrf.mxu1  ;;  %v515_v37 = vpop.f32.mrf.mxu0 }
 0x1be   :  { %v473_v40 = vadd.f32 %v472_v36, %v257_v32  ;;  %v516_v41 = vadd.f32 %v515_v37, %v265_v33  ;;  %v521_v50 = vmax.f32 %v471_v38, 0.0  ;;  %v523_v51 = vmax.f32 %v514_v39, 0.0 }
 0x1bf   :  { %v474_v44 = vpop.f32.mrf.mxu1  ;;  %v517_v45 = vpop.f32.mrf.mxu0 }
 0x1c0   :  { %v475_v46 = vadd.f32 %v474_v44, %v261_v30  ;;  %v518_v47 = vadd.f32 %v517_v45, %v269_v31  ;;  %v524_v48 = vmax.f32 %v473_v40, 0.0  ;;  %v526_v49 = vmax.f32 %v516_v41, 0.0 }
 0x1c2   :  { %v525_v52 = vmax.f32 %v475_v46, 0.0  ;;  %v527_v53 = vmax.f32 %v518_v47, 0.0  ;;  %v528_v58 = vpack.c.bf16 %v524_v48, %v520_v54  ;;  %v530_v59 = vpack.c.bf16 %v526_v49, %v522_v55 }
 0x1c4   :  { %v529_v56 = vpack.c.bf16 %v525_v52, %v521_v50  ;;  %v531_v57 = vpack.c.bf16 %v527_v53, %v523_v51 }
 0x1c6   :  { %762 = vmatprep.mubr.bf16.mxu1 %v529_v56  ;;  %803 = vmatprep.mubr.bf16.mxu0 %v531_v57 }
 0x1c7   :  { %763 = vmatmul.mubr.bf16.vlgmr.msra.gmra.mxu1 %v528_v58  ;;  %804 = vmatmul.mubr.bf16.vlgmr.msra.gmra.mxu0 %v530_v59 }
 0x287   :  { %v942_v60 = vpop.f32.mrf.mxu1  ;;  %v964_v61 = vpop.f32.mrf.mxu0 }
 0x289   :  { %v943_v63 = vpop.f32.mrf.mxu1  ;;  %v965_v0 = vpop.f32.mrf.mxu0 }
 0x28a   :  { %v944_v1 = vadd.f32 %v943_v63, %v942_v60  ;;  %v966_v5 = vadd.f32 %v965_v0, %v964_v61 }
 0x28b   :  { %v945_v2 = vpop.f32.mrf.mxu1  ;;  %v967_v3 = vpop.f32.mrf.mxu0 }
 0x28c   :  { %v765_v4 = vadd.f32 %v944_v1, %v884_v62 }
 0x28d   :  { %v946_v6 = vpop.f32.mrf.mxu1  ;;  %v968_v7 = vpop.f32.mrf.mxu0 }
 0x28e   :  { %v947_v8 = vadd.f32 %v946_v6, %v945_v2  ;;  %v806_v9 = vadd.f32 %v966_v5, %v765_v4  ;;  %v969_v11 = vadd.f32 %v968_v7, %v967_v3 }
 0x290   :  { %v768_v10 = vadd.f32 %v947_v8, %v884_v62  ;;  %v813_v12 = vsel %vm812_vm1, %v806_v9, -inf }
 0x291   :  { %814 = vmax.xlane.f32.xlu0 %v813_v12 }
 0x292   :  { %v809_v13 = vadd.f32 %v969_v11, %v768_v10 }
 0x294   :  { %v816_v14 = vsel %vm812_vm1, %v809_v13, -inf }
 0x295   :  { %817 = vmax.xlane.f32.xlu0 %v816_v14 }
 0x31a   :  { %v815_v15 = vpop.xlane.xlu0 %814 }
 0x31b   :  { %v819_v16 = vsub.f32 %v806_v9, %v815_v15 }
 0x31d   :  { %v821_v17 = vmul.f32 1.442695, %v819_v16 }
 0x31e   :  { %v818_v18 = vpop.xlane.xlu0 %817 }
 0x31f   :  { %1085 = vpow2.f32 %v821_v17  ;;  %v820_v19 = vsub.f32 %v809_v13, %v818_v18 }
 0x321   :  { %v823_v20 = vmul.f32 1.442695, %v820_v19 }
 0x323   :  { %1087 = vpow2.f32 %v823_v20 }
 0x32c   :  { %v1086_v21 = vpop.eup %1085 }
 0x32d   :  { %v825_v22 = vsel %vm812_vm1, %v1086_v21, 0.0 }
 0x32e   :  { %826 = vadd.xlane.f32.xlu1 %v825_v22 }
 0x330   :  { %v1088_v23 = vpop.eup %1087 }
 0x331   :  { %v828_v24 = vsel %vm812_vm1, %v1088_v23, 0.0 }
 0x332   :  { %829 = vadd.xlane.f32.xlu1 %v828_v24 }
 0x3b7   :  { %v827_v25 = vpop.xlane.xlu1 %826 }
 0x3b8   :  { %1089 = vrcp.f32 %v827_v25 }
 0x3bb   :  { %v830_v26 = vpop.xlane.xlu1 %829 }
 0x3bc   :  { %1091 = vrcp.f32 %v830_v26 }
 0x3c5   :  { %v1090_v27 = vpop.eup %1089 }
 0x3c6   :  { %v833_v28 = vmul.f32 %v1090_v27, %v1086_v21 }
 0x3c8   :  { %835 = vst.msk [vmem:[%s1273_s4] sm:$0xff] %vm812_vm1, %v833_v28 }
 0x3c9   :  { %v1092_v29 = vpop.eup %1091 }
 0x3ca   :  { %v834_v30 = vmul.f32 %v1092_v29, %v1088_v23 }
 0x3cc   :  { %836 = vst.msk [vmem:[%s1273_s4 + $0x8] sm:$0xff] %vm812_vm1, %v834_v30 }
 0x3cd   :  { %841 = vsyncpa [#allocation3], 1 }

</bundles_post_ra>
